<compile_context>
chip_gen: v7x
topology: tpu7x:2x2x1
jax: 0.10.0
libtpu: 0.0.40
codegen_flags: <defaults>
</compile_context>

<pallas_src>
import functools

import jax
import jax.numpy as jnp
from jax.experimental import pallas as pl
from jax.experimental.pallas import tpu as pltpu

LANES = 128
SUBLANES = 8
TARGET_BLOCK_BYTES = 8 << 20          # per-input, per-block VMEM target
MAX_ACCUMULATORS = 8                  # independent (8,128) partial accumulators

# Dimension-semantics constants with string fallbacks for older jax versions.
_ARBITRARY = getattr(pltpu, "ARBITRARY", "arbitrary")
_CORE_PARALLEL = getattr(pltpu, "CORE_PARALLEL", "parallel")

_NUM_TC_CACHE = None


def _num_tensorcores():
    """Conservative TensorCore-per-chip query (1 unless the runtime says 2)."""
    global _NUM_TC_CACHE
    if _NUM_TC_CACHE is not None:
        return _NUM_TC_CACHE
    n = 1
    try:
        info = pltpu.get_tpu_info()
        for name in ("num_cores", "core_count", "num_tensorcores",
                     "tensorcore_count", "cores_per_chip", "num_cores_per_chip"):
            v = getattr(info, name, None)
            if isinstance(v, int) and v > 0:
                n = v
                break
    except Exception:
        n = 1
    _NUM_TC_CACHE = n
    return n


def _sublane_granularity(*dtypes):
    """Minimum sublane multiple so every dtype keeps a packed layout."""
    g = SUBLANES
    for dt in dtypes:
        g = max(g, 32 // max(1, jnp.dtype(dt).itemsize))
    return g


def _round_up(x, m):
    return ((x + m - 1) // m) * m


def _mse_partial_kernel(rows, tiles_per_core, nacc, a_ref, b_ref, out_ref, acc_ref):
    """Per-core partial sum of (a - b)^2 over this core's row tiles.

    a_ref, b_ref : VMEM (tile_rows, LANES) tiles, native dtype
    out_ref      : SMEM (1, 1) float32 -- this core's partial sum
    acc_ref      : VMEM (nacc*8, LANES) float32 -- independent lane-parallel accumulators
    """
    c = pl.program_id(0)          # core / partial-sum index
    i = pl.program_id(1)          # row-tile index within this core

    @pl.when(i == 0)
    def _init():
        acc_ref[...] = jnp.zeros_like(acc_ref)

    tile_rows = a_ref.shape[0]
    blk = nacc * SUBLANES

    d = a_ref[...].astype(jnp.float32) - b_ref[...].astype(jnp.float32)
    dd = d * d

    # Logical start row of this tile (unclamped -> duplicated tiles fully masked).
    row0 = (c * tiles_per_core + i) * tile_rows
    is_full = row0 + tile_rows <= rows

    def accumulate(vals):
        # nacc independent (8,128) partial accumulators -> short dependency chains.
        acc_ref[...] += jnp.sum(vals.reshape(tile_rows // blk, blk, LANES), axis=0)

    @pl.when(is_full)
    def _fast():                                  # mask-free path for full tiles
        accumulate(dd)

    @pl.when(jnp.logical_not(is_full))
    def _masked():                                # only the ragged / duplicated tile
        row_ids = row0 + jax.lax.broadcasted_iota(jnp.int32, dd.shape, 0)
        accumulate(jnp.where(row_ids < rows, dd, 0.0))

    @pl.when(i == pl.num_programs(1) - 1)
    def _finalize():
        out_ref[0, 0] = jnp.sum(acc_ref[...])


@functools.partial(jax.jit, static_argnames=("max_tile_rows",))
def time_rebuild_loss(origin_data, recon_data, *, max_tile_rows=None):
    """MSE(recon_data, origin_data) with 'mean' reduction, via Pallas."""
    assert origin_data.shape == recon_data.shape
    n = origin_data.size
    out_dtype = jnp.result_type(origin_data.dtype, recon_data.dtype)

    flat_a = recon_data.reshape(-1)
    flat_b = origin_data.reshape(-1)

    n_main = (n // LANES) * LANES                 # lane-aligned prefix
    rows = n_main // LANES

    total = jnp.zeros((), jnp.float32)

    if rows > 0:
        # Pure reshape (no copy) when n is lane-aligned; prefix slice otherwise.
        a2 = (flat_a if n_main == n else flat_a[:n_main]).reshape(rows, LANES)
        b2 = (flat_b if n_main == n else flat_b[:n_main]).reshape(rows, LANES)

        sub_gran = _sublane_granularity(a2.dtype, b2.dtype)
        itemsize = max(jnp.dtype(a2.dtype).itemsize, jnp.dtype(b2.dtype).itemsize)
        cap = max(sub_gran, (TARGET_BLOCK_BYTES // (LANES * itemsize)) // 32 * 32)
        if max_tile_rows is not None:
            cap = min(cap, _round_up(int(max_tile_rows), sub_gran))
        tile_rows = min(cap, _round_up(rows, sub_gran))

        num_tiles = pl.cdiv(rows, tile_rows)
        detected_tc = _num_tensorcores()
        num_cores = 2 if (detected_tc == 2 and num_tiles >= 2) else 1
        tiles_per_core = pl.cdiv(num_tiles, num_cores)

        nacc = MAX_ACCUMULATORS
        while tile_rows % (nacc * SUBLANES) != 0:
            nacc //= 2

        def in_index_map(c, i):
            # Clamp so a core's overrun tile stays in bounds (its rows are masked).
            return (jnp.minimum(c * tiles_per_core + i, num_tiles - 1), 0)

        block_bytes = tile_rows * LANES * (
            jnp.dtype(a2.dtype).itemsize + jnp.dtype(b2.dtype).itemsize)
        vmem_limit = int(2 * block_bytes + (4 << 20))   # double-buffered + slack

        core_sem = _CORE_PARALLEL if num_cores > 1 else _ARBITRARY

        partials = pl.pallas_call(
            functools.partial(_mse_partial_kernel, rows, tiles_per_core, nacc),
            out_shape=jax.ShapeDtypeStruct((num_cores, 1), jnp.float32),
            grid_spec=pltpu.PrefetchScalarGridSpec(
                num_scalar_prefetch=0,
                grid=(num_cores, tiles_per_core),
                in_specs=[
                    pl.BlockSpec((tile_rows, LANES), in_index_map),
                    pl.BlockSpec((tile_rows, LANES), in_index_map),
                ],
                out_specs=pl.BlockSpec(
                    (1, 1), lambda c, i: (c, 0),
                    memory_space=pltpu.MemorySpace.SMEM,
                ),
                scratch_shapes=[pltpu.VMEM((nacc * SUBLANES, LANES), jnp.float32)],
            ),
            compiler_params=pltpu.CompilerParams(
                dimension_semantics=(core_sem, _ARBITRARY),
                vmem_limit_bytes=vmem_limit,
            ),
        )(a2, b2)
        total = total + jnp.sum(partials)

    if n_main < n:
        # <128-element ragged tail, reduced with plain jnp (no full-tensor pad/copy).
        ta = flat_a[n_main:].astype(jnp.float32)
        tb = flat_b[n_main:].astype(jnp.float32)
        total = total + jnp.sum((ta - tb) ** 2)

    return (total / jnp.float32(n)).astype(out_dtype)


if __name__ == "__main__":
    key = jax.random.PRNGKey(0)
    k1, k2, k3, k4, k5, k6 = jax.random.split(key, 6)

    # Case 1: small NCHW reconstruction tensors (single full tile, fast path).
    origin = jax.random.normal(k1, (2, 4, 16, 16), dtype=jnp.float32)
    recon = jax.random.normal(k2, (2, 4, 16, 16), dtype=jnp.float32)
    loss = time_rebuild_loss(origin, recon)
    jax.block_until_ready(loss)
    ref = jnp.mean((recon - origin) ** 2)
    assert jnp.allclose(loss, ref, rtol=1e-5, atol=1e-6), (loss, ref)

    # Case 2: ragged element count + tiny tiles -> multi-tile grid, in-kernel
    # overrun mask, and jnp tail path (no full-tensor pad/copy).
    origin2 = jax.random.normal(k3, (2, 3, 17, 23), dtype=jnp.float32)
    recon2 = jax.random.normal(k4, (2, 3, 17, 23), dtype=jnp.float32)
    loss2 = time_rebuild_loss(origin2, recon2, max_tile_rows=8)
    jax.block_until_ready(loss2)
    ref2 = jnp.mean((recon2 - origin2) ** 2)
    assert jnp.allclose(loss2, ref2, rtol=1e-5, atol=1e-6), (loss2, ref2)

    # Case 3: bf16 inputs, several tiles, last tile overruns -> masked branch,
    # multi-accumulator reduction, native-dtype DMA with in-kernel upcast.
    origin3 = jax.random.normal(k5, (2, 5, 256, 128), dtype=jnp.bfloat16)
    recon3 = jax.random.normal(k6, (2, 5, 256, 128), dtype=jnp.bfloat16)
    loss3 = time_rebuild_loss(origin3, recon3, max_tile_rows=1024)
    jax.block_until_ready(loss3)
    ref3 = jnp.mean((recon3.astype(jnp.float32) - origin3.astype(jnp.float32)) ** 2)
    assert jnp.allclose(loss3.astype(jnp.float32), ref3, rtol=2e-2), (loss3, ref3)

    print("KERNEL_OK")
</pallas_src>

<mosaic_0001>
module attributes {stable_mosaic.version = 11 : i64} {
  func.func @_mse_partial_kernel(%arg0: i32, %arg1: i32, %arg2: memref<16x128xf32, #tpu.memory_space<vmem>>, %arg3: memref<16x128xf32, #tpu.memory_space<vmem>>, %arg4: memref<1x1xf32, #tpu.memory_space<smem>>, %arg5: memref<16x128xf32, #tpu.memory_space<vmem>>) attributes {dimension_semantics = [#tpu.dimension_semantics<arbitrary>, #tpu.dimension_semantics<arbitrary>], iteration_bounds = array<i64: 1, 1>, scalar_prefetch = 0 : i64, scratch_operands = 1 : i64, tpu.core_type = #tpu.core_type<tc>, window_params = [{transform_indices = @transform_0, window_bounds = array<i64: 16, 128>}, {transform_indices = @transform_1, window_bounds = array<i64: 16, 128>}, {transform_indices = @transform_2, window_bounds = array<i64: 1, 1>}]} {
    %c0_i32 = arith.constant 0 : i32
    %0 = arith.cmpi eq, %arg1, %c0_i32 : i32
    %1 = arith.extui %0 : i1 to i32
    %c0_i32_0 = arith.constant 0 : i32
    %2 = arith.cmpi ne, %1, %c0_i32_0 : i32
    scf.if %2 {
      %cst = arith.constant 0.000000e+00 : f32
      %20 = vector.broadcast %cst : f32 to vector<16x128xf32>
      %c0_10 = arith.constant 0 : index
      %c0_11 = arith.constant 0 : index
      %21 = vector.load %arg5[%c0_10, %c0_11] : memref<16x128xf32, #tpu.memory_space<vmem>>, vector<16x128xf32>
      tpu.vector_store %arg5[%c0_10, %c0_11], %20 {strides = array<i32>} : memref<16x128xf32, #tpu.memory_space<vmem>>, vector<16x128xf32>,
    } else {
    }
    %c0 = arith.constant 0 : index
    %c0_1 = arith.constant 0 : index
    %3 = vector.load %arg2[%c0, %c0_1] : memref<16x128xf32, #tpu.memory_space<vmem>>, vector<16x128xf32>
    %c0_2 = arith.constant 0 : index
    %c0_3 = arith.constant 0 : index
    %4 = vector.load %arg3[%c0_2, %c0_3] : memref<16x128xf32, #tpu.memory_space<vmem>>, vector<16x128xf32>
    %5 = arith.subf %3, %4 : vector<16x128xf32>
    %6 = arith.mulf %5, %5 : vector<16x128xf32>
    %c1_i32 = arith.constant 1 : i32
    %7 = arith.muli %arg0, %c1_i32 : i32
    %8 = arith.addi %7, %arg1 : i32
    %c16_i32 = arith.constant 16 : i32
    %9 = arith.muli %8, %c16_i32 : i32
    %c16_i32_4 = arith.constant 16 : i32
    %10 = arith.addi %9, %c16_i32_4 : i32
    %c16_i32_5 = arith.constant 16 : i32
    %11 = arith.cmpi sle, %10, %c16_i32_5 : i32
    %12 = arith.extui %11 : i1 to i32
    %c0_i32_6 = arith.constant 0 : i32
    %13 = arith.cmpi ne, %12, %c0_i32_6 : i32
    scf.if %13 {
      %c0_10 = arith.constant 0 : index
      %c0_11 = arith.constant 0 : index
      %20 = vector.load %arg5[%c0_10, %c0_11] : memref<16x128xf32, #tpu.memory_space<vmem>>, vector<16x128xf32>
      %21 = vector.shape_cast %6 : vector<16x128xf32> to vector<1x16x128xf32>
      %cst = arith.constant dense<0.000000e+00> : vector<16x128xf32>
      %22 = vector.multi_reduction <add>, %21, %cst [0] : vector<1x16x128xf32> to vector<16x128xf32>
      %23 = arith.addf %20, %22 : vector<16x128xf32>
      %c0_12 = arith.constant 0 : index
      %c0_13 = arith.constant 0 : index
      %24 = vector.load %arg5[%c0_12, %c0_13] : memref<16x128xf32, #tpu.memory_space<vmem>>, vector<16x128xf32>
      tpu.vector_store %arg5[%c0_12, %c0_13], %23 {strides = array<i32>} : memref<16x128xf32, #tpu.memory_space<vmem>>, vector<16x128xf32>,
    } else {
    }
    %true = arith.constant true
    %14 = arith.xori %11, %true : i1
    %15 = arith.extui %14 : i1 to i32
    %c0_i32_7 = arith.constant 0 : i32
    %16 = arith.cmpi ne, %15, %c0_i32_7 : i32
    scf.if %16 {
      %20 = tpu.iota {dimensions = array<i32: 0>} : vector<16x128xi32>
      %21 = vector.broadcast %9 : i32 to vector<16x128xi32>
      %22 = arith.addi %21, %20 : vector<16x128xi32>
      %c16_i32_10 = arith.constant 16 : i32
      %23 = vector.broadcast %c16_i32_10 : i32 to vector<16x128xi32>
      %24 = arith.cmpi slt, %22, %23 : vector<16x128xi32>
      %cst = arith.constant 0.000000e+00 : f32
      %25 = vector.broadcast %cst : f32 to vector<16x128xf32>
      %26 = arith.select %24, %6, %25 : vector<16x128xi1>, vector<16x128xf32>
      %c0_11 = arith.constant 0 : index
      %c0_12 = arith.constant 0 : index
      %27 = vector.load %arg5[%c0_11, %c0_12] : memref<16x128xf32, #tpu.memory_space<vmem>>, vector<16x128xf32>
      %28 = vector.shape_cast %26 : vector<16x128xf32> to vector<1x16x128xf32>
      %cst_13 = arith.constant dense<0.000000e+00> : vector<16x128xf32>
      %29 = vector.multi_reduction <add>, %28, %cst_13 [0] : vector<1x16x128xf32> to vector<16x128xf32>
      %30 = arith.addf %27, %29 : vector<16x128xf32>
      %c0_14 = arith.constant 0 : index
      %c0_15 = arith.constant 0 : index
      %31 = vector.load %arg5[%c0_14, %c0_15] : memref<16x128xf32, #tpu.memory_space<vmem>>, vector<16x128xf32>
      tpu.vector_store %arg5[%c0_14, %c0_15], %30 {strides = array<i32>} : memref<16x128xf32, #tpu.memory_space<vmem>>, vector<16x128xf32>,
    } else {
    }
    %c0_i32_8 = arith.constant 0 : i32
    %17 = arith.cmpi eq, %arg1, %c0_i32_8 : i32
    %18 = arith.extui %17 : i1 to i32
    %c0_i32_9 = arith.constant 0 : i32
    %19 = arith.cmpi ne, %18, %c0_i32_9 : i32
    scf.if %19 {
      %c0_10 = arith.constant 0 : index
      %c0_11 = arith.constant 0 : index
      %20 = vector.load %arg5[%c0_10, %c0_11] : memref<16x128xf32, #tpu.memory_space<vmem>>, vector<16x128xf32>
      %21 = vector.shape_cast %20 : vector<16x128xf32> to vector<1x16x128xf32>
      %cst = arith.constant dense<0.000000e+00> : vector<1xf32>
      %22 = vector.multi_reduction <add>, %21, %cst [1, 2] : vector<1x16x128xf32> to vector<1xf32>
      %23 = vector.shape_cast %22 : vector<1xf32> to vector<1x1x1xf32>
      %24 = vector.extract %23[0, 0, 0] : f32 from vector<1x1x1xf32>
      %c0_12 = arith.constant 0 : index
      %c0_13 = arith.constant 0 : index
      %25 = memref.load %arg4[%c0_12, %c0_13] : memref<1x1xf32, #tpu.memory_space<smem>>
      memref.store %24, %arg4[%c0_12, %c0_13] : memref<1x1xf32, #tpu.memory_space<smem>>
    } else {
    }
    return
  }
  func.func @transform_0(%arg0: i32, %arg1: i32) -> (i32, i32) {
    %c1_i32 = arith.constant 1 : i32
    %0 = arith.muli %arg0, %c1_i32 : i32
    %1 = arith.addi %0, %arg1 : i32
    %c0_i32 = arith.constant 0 : i32
    %2 = arith.minsi %1, %c0_i32 : i32
    %c0_i32_0 = arith.constant 0 : i32
    %c0_i32_1 = arith.constant 0 : i32
    return %2, %c0_i32_0 : i32, i32
  }
  func.func @transform_1(%arg0: i32, %arg1: i32) -> (i32, i32) {
    %c1_i32 = arith.constant 1 : i32
    %0 = arith.muli %arg0, %c1_i32 : i32
    %1 = arith.addi %0, %arg1 : i32
    %c0_i32 = arith.constant 0 : i32
    %2 = arith.minsi %1, %c0_i32 : i32
    %c0_i32_0 = arith.constant 0 : i32
    %c0_i32_1 = arith.constant 0 : i32
    return %2, %c0_i32_0 : i32, i32
  }
  func.func @transform_2(%arg0: i32, %arg1: i32) -> (i32, i32) {
    %c0_i32 = arith.constant 0 : i32
    %c0_i32_0 = arith.constant 0 : i32
    return %arg0, %c0_i32 : i32, i32
  }
}

</mosaic_0001>

<bundles_post_ra>
// kernel: time_rebuild_loss.1
= control target key start
LH: loop header
LB: loop body
LE: loop exit
PB: predicated region body
PF: predicated region fallthrough
CT: control target
= control target key end

     0   :  { %s224_s0 = inlined_call_operand.vmem [shape: f32[16,128], index: 0, kind: input, shape index: {}]   ;;  %s225_s1 = inlined_call_operand.vmem [shape: f32[16,128], index: 1, kind: input, shape index: {}]   ;;  %s226_s2 = inlined_call_operand.hbm [shape: f32[1,1], index: 2, kind: output, shape index: {}]  }
   0x1   :  { %v82_v0 = vld [vmem:[%s224_s0] sm:$0xff]  ;;  %v83_v1 = vld [vmem:[%s224_s0 + $0x8] sm:$0xff] }
   0x2   :  { %v84_v2 = vld [vmem:[%s225_s1] sm:$0xff]  ;;  %v85_v3 = vld [vmem:[%s225_s1 + $0x8] sm:$0xff] }
   0x3   :  { %v86_v4 = vsub.f32 %v82_v0, %v84_v2 }
   0x4   :  { %7 = vsyncpa [#allocation4], 0  ;;  %v87_v5 = vsub.f32 %v83_v1, %v85_v3  ;;  %s172_s1 = scalar_lea.hbm %s226_s2, 16 }
   0x5   :  { %v88_v6 = vmul.f32 %v86_v4, %v86_v4  ;;  %p173_p0 = scmp.ne.s32.totalorder %s226_s2, %s172_s1  ;;  %p176_p1 = scmp.lt.u32.totalorder %s172_s1, %s226_s2 }
   0x6   :  { %v89_v7 = vmul.f32 %v87_v5, %v87_v5 }
   0x7   :  { %p178_p2 = pnand %p176_p1, %p173_p0 }
   0x8   :  { %v132_v8 = vadd.f32 %v89_v7, %v88_v6 }
   0xa   :  { %133 = vadd.xlane.f32.xlu0 %v132_v8 }
  0x97   :  { %v134_v9 = vpop.xlane.xlu0 %133 }
  0x98   :  { %v135_v10 = vrot.slane %v134_v9, 4 }
  0x9a   :  { %v136_v11 = vadd.f32 %v135_v10, %v134_v9 }
  0x9c   :  { %v137_v12 = vrot.slane %v136_v11, 2 }
  0x9e   :  { %v138_v13 = vadd.f32 %v137_v12, %v136_v11 }
  0xa0   :  { %v139_v14 = vrot.slane %v138_v13, 1 }
  0xa2   :  { %v140_v15 = vadd.f32 %v139_v14, %v138_v13 }
  0xa4   :  { %169 = vpush %v140_v15 }
  0xd5   :  { %s170_s0 = spop %169 }
  0xd6   :  { %143 = sst [smem:[#allocation3]] %s170_s0 }
  0xd7   :  { %181 = shalt.err (!%p178_p2)
}
  0xd8   :  { %s184_s23 = smov [#allocation3]  }
  0xd9   :  { %151 = dma.smem_to_hbm %s184_s23, 16, %s226_s2, [#allocation4]  }
  0xda   :  { %182 = dma.done.wait [#allocation4], 16  }
  0xdb   :  { %183 = vsyncadd [#allocation4], 4294967280 }
  0xdc   :  { %155 = sfence }
  0xdd   :  { %156 = vsyncpa [#allocation4], 1 }

</bundles_post_ra>
